<compile_context>
chip_gen: v7x
topology: tpu7x:2x2x1
jax: 0.10.0
libtpu: 0.0.40
codegen_flags: <defaults>
</compile_context>

<pallas_src>
import functools

import jax
import jax.numpy as jnp
from jax.experimental import pallas as pl
from jax.experimental.pallas import tpu as pltpu


def _round_up(a: int, b: int) -> int:
    return (a + b - 1) // b * b


def nnlm_kernel(x_ref, w1_ref, b1_ref, wcat_ref, b2_ref, out_ref):
    """One vocab tile:  out = concat([x, tanh(x@W1+b1)]) @ Wcat_tile + b2_tile."""
    x = x_ref[...]                                                    # (B, D)  bf16
    # Hidden layer: bf16 MXU matmul with f32 accumulation, tanh in f32.
    hpre = jnp.dot(x, w1_ref[...], preferred_element_type=jnp.float32) + b1_ref[...]
    hact = jnp.tanh(hpre).astype(jnp.bfloat16)                        # (B, Hp) bf16
    # Fused skip + MLP-output contraction over K = D + Hp (MXU does the add).
    a = jnp.concatenate([x, hact], axis=-1)                           # (B, D+Hp)
    out = jnp.dot(a, wcat_ref[...], preferred_element_type=jnp.float32) + b2_ref[...]
    out_ref[...] = out.astype(out_ref.dtype)


@functools.partial(jax.jit, static_argnames=("tn",))
def nnlm_pallas(x, w_skip, w1, b1, w2, b2, *, tn=512):
    """x:(B,D) f32, w_skip:(D,V), w1:(D,H), b1:(1,H), w2:(H,V), b2:(1,V) -> (B,V) f32."""
    B, D = x.shape
    H = w1.shape[1]
    V = w_skip.shape[1]

    # --- Lane-pad the hidden dim to a multiple of 128 (zero pad; exact no-op). ---
    Hp = _round_up(H, 128)
    if Hp != H:
        w1 = jnp.pad(w1, ((0, 0), (0, Hp - H)))
        b1 = jnp.pad(b1, ((0, 0), (0, Hp - H)))
        w2 = jnp.pad(w2, ((0, Hp - H), (0, 0)))

    # --- Fuse skip + MLP output weights once: (D+Hp, V). -------------------------
    w_cat = jnp.concatenate([w_skip, w2], axis=0)
    K = D + Hp

    # --- bf16 matmul operands (halves weight DMA), f32 biases/activations. -------
    xb = x.astype(jnp.bfloat16)
    w1b = w1.astype(jnp.bfloat16)
    wcb = w_cat.astype(jnp.bfloat16)
    b1f = b1.astype(jnp.float32)
    b2f = b2.astype(jnp.float32)

    # --- Tile the vocab axis; pad so the tile divides it evenly. ----------------
    tn = min(tn, _round_up(V, 128))
    Vp = _round_up(V, tn)
    if Vp != V:
        wcb = jnp.pad(wcb, ((0, 0), (0, Vp - V)))
        b2f = jnp.pad(b2f, ((0, 0), (0, Vp - V)))
    grid = (Vp // tn,)

    # --- VMEM budget: resident operands + double-buffered streamed tiles. -------
    resident = (B * D + D * Hp) * 2 + Hp * 4
    streamed = 2 * ((K * tn) * 2 + tn * 4 + (B * tn) * 4)
    vmem_limit = min(48 * 1024 * 1024, resident + streamed + (8 << 20))

    cost = pl.CostEstimate(
        flops=2 * B * (D * Hp + K * Vp),
        transcendentals=B * Hp * grid[0],
        bytes_accessed=(B * D * 2 + D * Hp * 2 + K * Vp * 2
                        + Hp * 4 + Vp * 4 + B * Vp * 4),
    )

    out = pl.pallas_call(
        nnlm_kernel,
        out_shape=jax.ShapeDtypeStruct((B, Vp), jnp.float32),
        grid=grid,
        in_specs=[
            pl.BlockSpec((B, D), lambda j: (0, 0)),    # x      (VMEM-resident)
            pl.BlockSpec((D, Hp), lambda j: (0, 0)),   # w1     (VMEM-resident)
            pl.BlockSpec((1, Hp), lambda j: (0, 0)),   # b1     (VMEM-resident)
            pl.BlockSpec((K, tn), lambda j: (0, j)),   # w_cat  (streamed / pipelined)
            pl.BlockSpec((1, tn), lambda j: (0, j)),   # b2     (streamed / pipelined)
        ],
        out_specs=pl.BlockSpec((B, tn), lambda j: (0, j)),
        compiler_params=pltpu.CompilerParams(
            # vocab tiles are independent -> megacore-split on v7x's 2 TCs
            dimension_semantics=("parallel",),
            vmem_limit_bytes=vmem_limit,
        ),
        cost_estimate=cost,
    )(xb, w1b, b1f, wcb, b2f)

    return out[:, :V]


def embed_with_max_norm(emb_weight, batch_idx, max_norm):
    # nn.Embedding(max_norm=...) clamps the L2 norm of each accessed row.
    # (PyTorch renorms the weight in place; for a single forward pass scaling
    #  the gathered activations is identical.)
    rows = jnp.take(emb_weight, batch_idx, axis=0)          # (B, n-1, m)
    norms = jnp.linalg.norm(rows, axis=-1, keepdims=True)
    scale = jnp.minimum(1.0, max_norm / jnp.maximum(norms, 1e-7))
    return rows * scale


def nnlm_forward(batch_idx, params, max_norm, *, tn=512):
    B = batch_idx.shape[0]
    x = embed_with_max_norm(params["emb"], batch_idx, max_norm).reshape(B, -1)
    return nnlm_pallas(x, params["w_skip"], params["w1"], params["b1"],
                       params["w2"], params["b2"], tn=tn)


if __name__ == "__main__":
    # Model hyperparameters (small, tile-friendly):
    n = 5           # context size -> n-1 = 4 previous words
    V = 1024        # vocabulary size (tiled over the grid)
    m = 32          # embedding dim  -> D = (n-1)*m = 128
    h = 32          # hidden dim (zero-padded to 128 lanes inside the wrapper)
    max_norm = 1.0
    B = 8           # batch size (raise for real MXU utilization)

    D = (n - 1) * m

    key = jax.random.PRNGKey(0)
    k_emb, k_ws, k_w1, k_b1, k_w2, k_b2, k_idx = jax.random.split(key, 7)

    params = {
        "emb":    jax.random.normal(k_emb, (V, m), jnp.float32) * 0.5,
        "w_skip": jax.random.normal(k_ws,  (D, V), jnp.float32) * 0.05,
        "w1":     jax.random.normal(k_w1,  (D, h), jnp.float32) * 0.05,
        "b1":     jax.random.normal(k_b1,  (1, h), jnp.float32) * 0.05,
        "w2":     jax.random.normal(k_w2,  (h, V), jnp.float32) * 0.05,
        "b2":     jax.random.normal(k_b2,  (1, V), jnp.float32) * 0.05,
    }
    batch_idx = jax.random.randint(k_idx, (B, n - 1), 0, V, jnp.int32)

    # tn=256 -> 4 vocab tiles: exercises the pipelined grid at this small V.
    out = nnlm_forward(batch_idx, params, max_norm, tn=256)
    out = jax.block_until_ready(out)
    assert out.shape == (B, V)

    # Reference matching the kernel's arithmetic (bf16 matmul operands,
    # f32 accumulation / tanh / biases).
    x_f32 = embed_with_max_norm(params["emb"], batch_idx, max_norm).reshape(B, -1)
    xb = x_f32.astype(jnp.bfloat16).astype(jnp.float32)
    w1b = params["w1"].astype(jnp.bfloat16).astype(jnp.float32)
    wsb = params["w_skip"].astype(jnp.bfloat16).astype(jnp.float32)
    w2b = params["w2"].astype(jnp.bfloat16).astype(jnp.float32)
    hid = jnp.tanh(xb @ w1b + params["b1"])
    hidb = hid.astype(jnp.bfloat16).astype(jnp.float32)
    ref = xb @ wsb + hidb @ w2b + params["b2"]
    assert jnp.allclose(out, ref, atol=2e-3, rtol=2e-3), (
        float(jnp.max(jnp.abs(out - ref))))

    # Coarser sanity check against the pure-f32 PyTorch-equivalent math.
    ref_f32 = (x_f32 @ params["w_skip"]
               + jnp.tanh(x_f32 @ params["w1"] + params["b1"]) @ params["w2"]
               + params["b2"])
    assert jnp.allclose(out, ref_f32, atol=5e-2, rtol=5e-2)

    print("KERNEL_OK")
</pallas_src>

<mosaic_0001>
module attributes {stable_mosaic.version = 11 : i64} {
  func.func @nnlm_kernel(%arg0: i32, %arg1: memref<8x128xbf16, #tpu.memory_space<vmem>>, %arg2: memref<128x128xbf16, #tpu.memory_space<vmem>>, %arg3: memref<1x128xf32, #tpu.memory_space<vmem>>, %arg4: memref<256x256xbf16, #tpu.memory_space<vmem>>, %arg5: memref<1x256xf32, #tpu.memory_space<vmem>>, %arg6: memref<8x256xf32, #tpu.memory_space<vmem>>) attributes {dimension_semantics = [#tpu.dimension_semantics<parallel>], iteration_bounds = array<i64: 4>, scalar_prefetch = 0 : i64, scratch_operands = 0 : i64, tpu.core_type = #tpu.core_type<tc>, window_params = [{pipeline_mode = #tpu.pipeline_mode<synchronous>, transform_indices = @transform_0, window_bounds = array<i64: 8, 128>}, {pipeline_mode = #tpu.pipeline_mode<synchronous>, transform_indices = @transform_1, window_bounds = array<i64: 128, 128>}, {pipeline_mode = #tpu.pipeline_mode<synchronous>, transform_indices = @transform_2, window_bounds = array<i64: 1, 128>}, {transform_indices = @transform_3, window_bounds = array<i64: 256, 256>}, {transform_indices = @transform_4, window_bounds = array<i64: 1, 256>}, {transform_indices = @transform_5, window_bounds = array<i64: 8, 256>}]} {
    %c0 = arith.constant 0 : index
    %c0_0 = arith.constant 0 : index
    %0 = vector.load %arg1[%c0, %c0_0] : memref<8x128xbf16, #tpu.memory_space<vmem>>, vector<8x128xbf16>
    %c0_1 = arith.constant 0 : index
    %c0_2 = arith.constant 0 : index
    %1 = vector.load %arg2[%c0_1, %c0_2] : memref<128x128xbf16, #tpu.memory_space<vmem>>, vector<128x128xbf16>
    %cst = arith.constant dense<0.000000e+00> : vector<8x128xf32>
    %2 = tpu.matmul %0, %1, %cst {dimension_numbers = #tpu.dot_dimension_numbers<[1], [0], [0], [1], [0, 0, 1, 1], [], []>} : vector<8x128xbf16>, vector<128x128xbf16>, vector<8x128xf32> -> vector<8x128xf32>
    %c0_3 = arith.constant 0 : index
    %c0_4 = arith.constant 0 : index
    %3 = vector.load %arg3[%c0_3, %c0_4] : memref<1x128xf32, #tpu.memory_space<vmem>>, vector<1x128xf32>
    %4 = vector.broadcast %3 : vector<1x128xf32> to vector<8x128xf32>
    %5 = arith.addf %2, %4 : vector<8x128xf32>
    %6 = math.tanh %5 : vector<8x128xf32>
    %7 = arith.truncf %6 : vector<8x128xf32> to vector<8x128xbf16>
    %8 = tpu.concatenate %0, %7 in 1 : vector<8x128xbf16>, vector<8x128xbf16> -> vector<8x256xbf16>
    %c0_5 = arith.constant 0 : index
    %c0_6 = arith.constant 0 : index
    %9 = vector.load %arg4[%c0_5, %c0_6] : memref<256x256xbf16, #tpu.memory_space<vmem>>, vector<256x256xbf16>
    %cst_7 = arith.constant dense<0.000000e+00> : vector<8x256xf32>
    %10 = tpu.matmul %8, %9, %cst_7 {dimension_numbers = #tpu.dot_dimension_numbers<[1], [0], [0], [1], [0, 0, 1, 1], [], []>} : vector<8x256xbf16>, vector<256x256xbf16>, vector<8x256xf32> -> vector<8x256xf32>
    %c0_8 = arith.constant 0 : index
    %c0_9 = arith.constant 0 : index
    %11 = vector.load %arg5[%c0_8, %c0_9] : memref<1x256xf32, #tpu.memory_space<vmem>>, vector<1x256xf32>
    %12 = vector.broadcast %11 : vector<1x256xf32> to vector<8x256xf32>
    %13 = arith.addf %10, %12 : vector<8x256xf32>
    %c0_10 = arith.constant 0 : index
    %c0_11 = arith.constant 0 : index
    %14 = vector.load %arg6[%c0_10, %c0_11] : memref<8x256xf32, #tpu.memory_space<vmem>>, vector<8x256xf32>
    tpu.vector_store %arg6[%c0_10, %c0_11], %13 {strides = array<i32>} : memref<8x256xf32, #tpu.memory_space<vmem>>, vector<8x256xf32>,
    return
  }
  func.func @transform_0(%arg0: i32) -> (i32, i32) {
    %c0_i32 = arith.constant 0 : i32
    %c0_i32_0 = arith.constant 0 : i32
    %c0_i32_1 = arith.constant 0 : i32
    return %c0_i32, %c0_i32_0 : i32, i32
  }
  func.func @transform_1(%arg0: i32) -> (i32, i32) {
    %c0_i32 = arith.constant 0 : i32
    %c0_i32_0 = arith.constant 0 : i32
    %c0_i32_1 = arith.constant 0 : i32
    return %c0_i32, %c0_i32_0 : i32, i32
  }
  func.func @transform_2(%arg0: i32) -> (i32, i32) {
    %c0_i32 = arith.constant 0 : i32
    %c0_i32_0 = arith.constant 0 : i32
    %c0_i32_1 = arith.constant 0 : i32
    return %c0_i32, %c0_i32_0 : i32, i32
  }
  func.func @transform_3(%arg0: i32) -> (i32, i32) {
    %c0_i32 = arith.constant 0 : i32
    %c0_i32_0 = arith.constant 0 : i32
    return %c0_i32, %arg0 : i32, i32
  }
  func.func @transform_4(%arg0: i32) -> (i32, i32) {
    %c0_i32 = arith.constant 0 : i32
    %c0_i32_0 = arith.constant 0 : i32
    return %c0_i32, %arg0 : i32, i32
  }
  func.func @transform_5(%arg0: i32) -> (i32, i32) {
    %c0_i32 = arith.constant 0 : i32
    %c0_i32_0 = arith.constant 0 : i32
    return %c0_i32, %arg0 : i32, i32
  }
}

</mosaic_0001>

<bundles_post_ra>
// kernel: nnlm_pallas.1
= control target key start
LH: loop header
LB: loop body
LE: loop exit
PB: predicated region body
PF: predicated region fallthrough
CT: control target
= control target key end

     0   :  { %10 = vsyncpa [#allocation4], 0  ;;  %s1380_s0 = inlined_call_operand.vmem [shape: bf16[8,128], index: 0, kind: input, shape index: {}]   ;;  %s1381_s1 = inlined_call_operand.vmem [shape: bf16[128,128], index: 1, kind: input, shape index: {}]   ;;  %s1382_s2 = inlined_call_operand.vmem [shape: f32[1,128], index: 2, kind: input, shape index: {}]   ;;  %s1383_s3 = inlined_call_operand.vmem [shape: bf16[256,1024], index: 3, kind: input, shape index: {}]   ;;  %s1384_s4 = inlined_call_operand.vmem [shape: f32[1,1024], index: 4, kind: input, shape index: {}]   ;;  %s1385_s5 = inlined_call_operand.hbm [shape: f32[8,1024], index: 5, kind: output, shape index: {}]  }
   0x1   :  { %12 = vsyncpa [#allocation4 + $0x1], 0  ;;  %s1137_s18 = smov 0   ;;  %s1139_s19 = smov 0  }
   0x2   :  { %s1141_s20 = smov 0   ;;  %s1143_s21 = smov 0  }
   0x3 LB: > { %s1158_s22 = sadd.s32 4294967295, %s1102_s21   ;;  %s854_s23 = sadd.s32 4294967294, %s1102_s21   ;;  %s1102_s21 = sphi %s1143_s21, %s1391_s21   ;;  %s1098_s20 = sphi %s1141_s20, %s1390_s20   ;;  %s1094_s19 = sphi %s1139_s19, %s1389_s19   ;;  %s1090_s18 = sphi %s1137_s18, %s1388_s18  }
   0x4   : > { %s1162_s24 = sadd.s32 1, %s1102_s21   ;;  %s88_s25 = sadd.s32 1, %s1098_s20 }
   0x5   : > { %s85_s26 = ssub.s32 %s1102_s21, %s1162_s24  ;;  %p95_p0 = scmp.ne.s32.totalorder %s1098_s20, %s1094_s19 }
   0x6   : > { %p86_p1 = scmp.eq.s32.totalorder %s85_s26, 0  ;;  %p96_p2 = scmp.eq.s32.totalorder %s1102_s21, 0 }
   0x7   : > { %p151_p3 = scmp.eq.s32.totalorder %s1158_s22, 3  ;;  %p156_p4 = scmp.ne.s32.totalorder %s1094_s19, %s1090_s18 }
   0x8   : > { %s1174_s27 = scalar_select %p86_p1, %s1098_s20, %s88_s25  }
   0x9   : > { %p97_p5 = por %p96_p2, %p95_p0  ;;  %p1176_p6 = por %p151_p3, %p95_p0 }
   0xa   : > { %p157_p7 = scmp.eq.s32.totalorder %s854_s23, 3  ;;  %p856_p9 = scmp.ge.s32.totalorder %s1102_s21, 4 }
   0xc   : > { %p1180_p8 = por %p157_p7, %p156_p4  ;;  %182 = sbr.rel (%p856_p9) target bundleno = 55 (0x37), region = 28 }
  0x13   : > { %185 = sbr.rel (!%p97_p5) target bundleno = 55 (0x37), region = 32  ;;  %s187_s30 = sand.u32 (%p97_p5), 1, %s1098_s20  }
  0x14   : > { %s910_s6 = sshll.u32 (%p97_p5), %s1102_s21, 3  ;;  %s857_s7 = sshll.u32 (%p97_p5), %s187_s30, 8 }
  0x15   : > { %s1190_s10 = scalar_lea.vmem (%p97_p5), %s1383_s3, %s910_s6  ;;  %s1195_s11 = scalar_lea.vmem (%p97_p5), [#allocation2], %s857_s7 }
  0x16   : > { %v282_v0 = vld [vmem:[%s1190_s10] sm:$0xff] (%p97_p5) }
  0x17   : > { %v284_v1 = vld [vmem:[%s1190_s10 + $0x20] sm:$0xff] (%p97_p5)  ;;  %283 = vst [vmem:[%s1195_s11] sm:$0xff] (%p97_p5), %v282_v0 }
  0x18   : > { %v286_v2 = vld [vmem:[%s1190_s10 + $0x40] sm:$0xff] (%p97_p5)  ;;  %285 = vst [vmem:[%s1195_s11 + $0x8] sm:$0xff] (%p97_p5), %v284_v1 }
  0x19   : > { %287 = vst [vmem:[%s1195_s11 + $0x10] sm:$0xff] (%p97_p5), %v286_v2  ;;  %v288_v3 = vld [vmem:[%s1190_s10 + $0x60] sm:$0xff] (%p97_p5) }
  0x1a   : > { %v290_v4 = vld [vmem:[%s1190_s10 + $0x80] sm:$0xff]  ;;  %289 = vst [vmem:[%s1195_s11 + $0x18] sm:$0xff] %v288_v3 }
  0x1b   : > { %v292_v5 = vld [vmem:[%s1190_s10 + $0xa0] sm:$0xff]  ;;  %291 = vst [vmem:[%s1195_s11 + $0x20] sm:$0xff] %v290_v4 }
  0x1c   : > { %293 = vst [vmem:[%s1195_s11 + $0x28] sm:$0xff] %v292_v5  ;;  %v294_v6 = vld [vmem:[%s1190_s10 + $0xc0] sm:$0xff] }
  0x1d   : > { %v296_v7 = vld [vmem:[%s1190_s10 + $0xe0] sm:$0xff]  ;;  %295 = vst [vmem:[%s1195_s11 + $0x30] sm:$0xff] %v294_v6 }
  0x1e   : > { %v298_v8 = vld [vmem:[%s1190_s10 + $0x100] sm:$0xff]  ;;  %297 = vst [vmem:[%s1195_s11 + $0x38] sm:$0xff] %v296_v7 }
  0x1f   : > { %299 = vst [vmem:[%s1195_s11 + $0x40] sm:$0xff] %v298_v8  ;;  %v300_v9 = vld [vmem:[%s1190_s10 + $0x120] sm:$0xff] }
  0x20   : > { %v302_v10 = vld [vmem:[%s1190_s10 + $0x140] sm:$0xff]  ;;  %301 = vst [vmem:[%s1195_s11 + $0x48] sm:$0xff] %v300_v9 }
  0x21   : > { %v304_v11 = vld [vmem:[%s1190_s10 + $0x160] sm:$0xff]  ;;  %303 = vst [vmem:[%s1195_s11 + $0x50] sm:$0xff] %v302_v10 }
  0x22   : > { %305 = vst [vmem:[%s1195_s11 + $0x58] sm:$0xff] %v304_v11  ;;  %v306_v12 = vld [vmem:[%s1190_s10 + $0x180] sm:$0xff] }
  0x23   : > { %v308_v13 = vld [vmem:[%s1190_s10 + $0x1a0] sm:$0xff]  ;;  %307 = vst [vmem:[%s1195_s11 + $0x60] sm:$0xff] %v306_v12 }
  0x24   : > { %v310_v14 = vld [vmem:[%s1190_s10 + $0x1c0] sm:$0xff]  ;;  %309 = vst [vmem:[%s1195_s11 + $0x68] sm:$0xff] %v308_v13 }
  0x25   : > { %311 = vst [vmem:[%s1195_s11 + $0x70] sm:$0xff] %v310_v14  ;;  %v312_v15 = vld [vmem:[%s1190_s10 + $0x1e0] sm:$0xff] }
  0x26   : > { %v314_v16 = vld [vmem:[%s1190_s10 + $0x200] sm:$0xff]  ;;  %313 = vst [vmem:[%s1195_s11 + $0x78] sm:$0xff] %v312_v15 }
  0x27   : > { %v316_v17 = vld [vmem:[%s1190_s10 + $0x220] sm:$0xff]  ;;  %315 = vst [vmem:[%s1195_s11 + $0x80] sm:$0xff] %v314_v16 }
  0x28   : > { %317 = vst [vmem:[%s1195_s11 + $0x88] sm:$0xff] %v316_v17  ;;  %v318_v18 = vld [vmem:[%s1190_s10 + $0x240] sm:$0xff] }
  0x29   : > { %v320_v19 = vld [vmem:[%s1190_s10 + $0x260] sm:$0xff]  ;;  %319 = vst [vmem:[%s1195_s11 + $0x90] sm:$0xff] %v318_v18 }
  0x2a   : > { %v322_v20 = vld [vmem:[%s1190_s10 + $0x280] sm:$0xff]  ;;  %321 = vst [vmem:[%s1195_s11 + $0x98] sm:$0xff] %v320_v19 }
  0x2b   : > { %323 = vst [vmem:[%s1195_s11 + $0xa0] sm:$0xff] %v322_v20  ;;  %v324_v21 = vld [vmem:[%s1190_s10 + $0x2a0] sm:$0xff] }
  0x2c   : > { %v326_v22 = vld [vmem:[%s1190_s10 + $0x2c0] sm:$0xff]  ;;  %325 = vst [vmem:[%s1195_s11 + $0xa8] sm:$0xff] %v324_v21 }
  0x2d   : > { %v328_v23 = vld [vmem:[%s1190_s10 + $0x2e0] sm:$0xff]  ;;  %327 = vst [vmem:[%s1195_s11 + $0xb0] sm:$0xff] %v326_v22 }
  0x2e   : > { %329 = vst [vmem:[%s1195_s11 + $0xb8] sm:$0xff] %v328_v23  ;;  %v330_v24 = vld [vmem:[%s1190_s10 + $0x300] sm:$0xff] }
  0x2f   : > { %v332_v25 = vld [vmem:[%s1190_s10 + $0x320] sm:$0xff]  ;;  %331 = vst [vmem:[%s1195_s11 + $0xc0] sm:$0xff] %v330_v24 }
  0x30   : > { %v334_v26 = vld [vmem:[%s1190_s10 + $0x340] sm:$0xff]  ;;  %333 = vst [vmem:[%s1195_s11 + $0xc8] sm:$0xff] %v332_v25 }
  0x31   : > { %335 = vst [vmem:[%s1195_s11 + $0xd0] sm:$0xff] %v334_v26  ;;  %v336_v27 = vld [vmem:[%s1190_s10 + $0x360] sm:$0xff] }
  0x32   : > { %v338_v28 = vld [vmem:[%s1190_s10 + $0x380] sm:$0xff]  ;;  %337 = vst [vmem:[%s1195_s11 + $0xd8] sm:$0xff] %v336_v27 }
  0x33   : > { %v340_v29 = vld [vmem:[%s1190_s10 + $0x3a0] sm:$0xff]  ;;  %339 = vst [vmem:[%s1195_s11 + $0xe0] sm:$0xff] %v338_v28 }
  0x34   : > { %341 = vst [vmem:[%s1195_s11 + $0xe8] sm:$0xff] %v340_v29  ;;  %v342_v30 = vld [vmem:[%s1190_s10 + $0x3c0] sm:$0xff] }
  0x35   : > { %v344_v31 = vld [vmem:[%s1190_s10 + $0x3e0] sm:$0xff]  ;;  %343 = vst [vmem:[%s1195_s11 + $0xf0] sm:$0xff] %v342_v30 }
  0x36   : > { %345 = vst [vmem:[%s1195_s11 + $0xf8] sm:$0xff] %v344_v31 }
  0x37 PF: > { %p860_p10 = scmp.ge.s32.totalorder %s1102_s21, 1  ;;  %p358_p11 = scmp.lt.s32.totalorder %s1102_s21, 5 }
  0x39   : > { %p359_p12 = pnand %p860_p10, %p358_p11 }
  0x3a   : > { %v982_v32 = vld [vmem:[%s1381_s1] sm:$0xff] (!%p359_p12)   ;;  %v1104_v33 = vmov (!%p359_p12), 0.0   ;;  %v983_v34 = vld [vmem:[%s1381_s1 + $0x8] sm:$0xff] (!%p359_p12)   ;;  %vm1105_vm0 = vmmov (!%p359_p12), 0   ;;  %s1267_s16 = sand.u32 (!%p359_p12), 1, %s1094_s19   ;;  %v984_v35 = vld [vmem:[%s1381_s1 + $0x10] sm:$0xff] (!%p359_p12)   ;;  %v552_v18 = vlaneseq (!%p359_p12) }
  0x3b   : > { %362 = sbr.rel (%p359_p12) target bundleno = 548 (0x224), region = 74  ;;  %921 = vmatprep.subr.bf16.mxu0 (!%p359_p12), %v1104_v33  ;;  %937 = vmatprep.mubr.msk.bf16.mxu0 (!%p359_p12), %vm1105_vm0, %v1104_v33  ;;  %s861_s17 = sshll.u32 (!%p359_p12), %s1267_s16, 8  ;;  %v985_v38 = vld [vmem:[%s1381_s1 + $0x18] sm:$0xff] (!%p359_p12)   ;;  %v986_v42 = vld [vmem:[%s1381_s1 + $0x20] sm:$0xff] (!%p359_p12)   ;;  %v987_v45 = vld [vmem:[%s1381_s1 + $0x28] sm:$0xff] (!%p359_p12)  }
  0x3c   : > { %922 = vmatpush3.bf16.msra.mxu0 (!%p359_p12), %v982_v32  ;;  %s1273_s26 = scalar_lea.vmem (!%p359_p12), [#allocation2], %s861_s17  ;;  %v988_v48 = vld [vmem:[%s1381_s1 + $0x30] sm:$0xff] (!%p359_p12)   ;;  %v989_v49 = vld [vmem:[%s1381_s1 + $0x38] sm:$0xff] (!%p359_p12)   ;;  %v404_v54 = vld [vmem:[%s1380_s0] sm:$0xf] (!%p359_p12)  ;;  %s863_s30 = sshll.u32 (!%p359_p12), %s1158_s22, 1 }
  0x3d   : > { %923 = vmatprep.subr.bf16.mxu0 (!%p359_p12), %v1104_v33  ;;  %v990_v36 = vld [vmem:[%s1273_s26 + $0x4] ss:$8 sps:$4 sm:$0xff] (!%p359_p12)   ;;  %v992_v37 = vld [vmem:[%s1273_s26] ss:$8 sps:$4 sm:$0xff] (!%p359_p12)   ;;  %v993_v39 = vld [vmem:[%s1273_s26 + $0x14] ss:$8 sps:$4 sm:$0xff] (!%p359_p12)  }
  0x3e   : > { %722 = vmatprep.subr.bf16.mxu1 (!%p359_p12), %v990_v36  ;;  %v995_v40 = vld [vmem:[%s1273_s26 + $0x10] ss:$8 sps:$4 sm:$0xff] (!%p359_p12)   ;;  %v996_v41 = vld [vmem:[%s1273_s26 + $0x24] ss:$8 sps:$4 sm:$0xff] (!%p359_p12)   ;;  %v998_v43 = vld [vmem:[%s1273_s26 + $0x20] ss:$8 sps:$4 sm:$0xff] (!%p359_p12)  }
  0x3f   : > { %723 = vmatpush1.bf16.msra.mxu1 (!%p359_p12), %v992_v37  ;;  %v999_v44 = vld [vmem:[%s1273_s26 + $0x34] ss:$8 sps:$4 sm:$0xff] (!%p359_p12)   ;;  %v1001_v46 = vld [vmem:[%s1273_s26 + $0x30] ss:$8 sps:$4 sm:$0xff] (!%p359_p12)   ;;  %v1002_v47 = vld [vmem:[%s1273_s26 + $0x44] ss:$8 sps:$4 sm:$0xff] (!%p359_p12)  }
  0x40   : > { %924 = vmatpush3.bf16.msra.mxu0 (!%p359_p12), %v983_v34  ;;  %724 = vmatprep.subr.bf16.mxu1 (!%p359_p12), %v993_v39  ;;  %v1004_v50 = vld [vmem:[%s1273_s26 + $0x40] ss:$8 sps:$4 sm:$0xff] (!%p359_p12)   ;;  %v1005_v51 = vld [vmem:[%s1273_s26 + $0x54] ss:$8 sps:$4 sm:$0xff] (!%p359_p12)   ;;  %v1007_v52 = vld [vmem:[%s1273_s26 + $0x50] ss:$8 sps:$4 sm:$0xff] (!%p359_p12)  }
  0x41   : > { %925 = vmatprep.subr.bf16.mxu0 (!%p359_p12), %v1104_v33  ;;  %v1008_v53 = vld [vmem:[%s1273_s26 + $0x64] ss:$8 sps:$4 sm:$0xff] (!%p359_p12)   ;;  %v1010_v55 = vld [vmem:[%s1273_s26 + $0x60] ss:$8 sps:$4 sm:$0xff] (!%p359_p12)   ;;  %v1011_v56 = vld [vmem:[%s1273_s26 + $0x74] ss:$8 sps:$4 sm:$0xff] (!%p359_p12)  }
  0x42   : > { %v1013_v57 = vld [vmem:[%s1273_s26 + $0x70] ss:$8 sps:$4 sm:$0xff]   ;;  %v1014_v58 = vld [vmem:[%s1273_s26 + $0x84] ss:$8 sps:$4 sm:$0xff]   ;;  %v1016_v59 = vld [vmem:[%s1273_s26 + $0x80] ss:$8 sps:$4 sm:$0xff]  }
  0x43   : > { %725 = vmatpush1.bf16.msra.mxu1 %v995_v40  ;;  %v1017_v60 = vld [vmem:[%s1273_s26 + $0x94] ss:$8 sps:$4 sm:$0xff]   ;;  %v1019_v61 = vld [vmem:[%s1273_s26 + $0x90] ss:$8 sps:$4 sm:$0xff]   ;;  %v1020_v62 = vld [vmem:[%s1273_s26 + $0xa4] ss:$8 sps:$4 sm:$0xff]  }
  0x44   : > { %926 = vmatpush3.bf16.msra.mxu0 %v984_v35  ;;  %726 = vmatprep.subr.bf16.mxu1 %v996_v41  ;;  %v1022_v63 = vld [vmem:[%s1273_s26 + $0xa0] ss:$8 sps:$4 sm:$0xff]   ;;  %v1023_v0 = vld [vmem:[%s1273_s26 + $0xb4] ss:$8 sps:$4 sm:$0xff]   ;;  %v1025_v1 = vld [vmem:[%s1273_s26 + $0xb0] ss:$8 sps:$4 sm:$0xff]  }
  0x45   : > { %927 = vmatprep.subr.bf16.mxu0 %v1104_v33  ;;  %v1026_v2 = vld [vmem:[%s1273_s26 + $0xc4] ss:$8 sps:$4 sm:$0xff]   ;;  %v1028_v3 = vld [vmem:[%s1273_s26 + $0xc0] ss:$8 sps:$4 sm:$0xff]   ;;  %v1029_v4 = vld [vmem:[%s1273_s26 + $0xd4] ss:$8 sps:$4 sm:$0xff]  }
  0x46   : > { %v1031_v5 = vld [vmem:[%s1273_s26 + $0xd0] ss:$8 sps:$4 sm:$0xff]   ;;  %v1032_v6 = vld [vmem:[%s1273_s26 + $0xe4] ss:$8 sps:$4 sm:$0xff]   ;;  %v1034_v7 = vld [vmem:[%s1273_s26 + $0xe0] ss:$8 sps:$4 sm:$0xff]  }
  0x47   : > { %727 = vmatpush1.bf16.msra.mxu1 %v998_v43  ;;  %v1035_v8 = vld [vmem:[%s1273_s26 + $0xf4] ss:$8 sps:$4 sm:$0xff]   ;;  %v1037_v9 = vld [vmem:[%s1273_s26 + $0xf0] ss:$8 sps:$4 sm:$0xff]   ;;  %v864_v10 = vld [vmem:[%s1382_s2] ss:$0 sm:$0xff] }
  0x48   : > { %928 = vmatpush3.bf16.msra.mxu0 %v985_v38  ;;  %728 = vmatprep.subr.bf16.mxu1 %v999_v44  ;;  %p398_p13 = scmp.lt.s32.totalorder %s863_s30, 7  ;;  %v553_v19 = vshrl.u32 %v552_v18, 7  ;;  %s862_s8 = sshll.u32 %s1267_s16, 4 }
  0x49   : > { %929 = vmatprep.subr.bf16.mxu0 %v1104_v33  ;;  %s911_s9 = sshll.u32 %s1158_s22, 8  ;;  %s395_s10 = scalar_lea.vmem [#allocation3], %s862_s8 }
  0x4a   : > { %s1393_s30 = smov (!%p398_p13, %s863_s30), 7  ;;  %v554_v20 = vsub.s32 0, %v553_v19  ;;  %v558_v22 = vsub.s32 1, %v553_v19  ;;  %s780_s11 = sshll.u32 %s395_s10, 4  ;;  %s1339_s11 = int_to_ptr.vmem [resolvable:$true] %s780_s11 }
  0x4b   : > { %729 = vmatpush1.bf16.msra.mxu1 %v1001_v46  ;;  %s400_s7 = scalar_lea.vmem %s1384_s4, %s1393_s30  ;;  %s1337_s14 = scalar_lea.hbm %s1385_s5, %s911_s9 }
  0x4c   : > { %930 = vmatpush3.bf16.msra.mxu0 %v986_v42  ;;  %730 = vmatprep.subr.bf16.mxu1 %v1002_v47  ;;  %v550_v21 = vld [vmem:[%s400_s7] sm:$0x3]  ;;  %s766_s22 = scalar_lea.sflag [#allocation4], %s1267_s16  ;;  %s1040_s15 = scalar_lea.vmem %s1339_s11, 256 }
  0x4d   : > { %931 = vmatprep.subr.bf16.mxu0 %v1104_v33  ;;  %v555_v23 = vrot.slane %v550_v21, %v554_v20  ;;  %v559_v24 = vrot.slane %v550_v21, %v558_v22  ;;  %p1041_p0 = scmp.ne.s32.totalorder %s1339_s11, %s1040_s15  ;;  %s1106_s17 = smov [#allocation3]  }
  0x4e   : > { %s1044_s23 = sshll.u32 %s1106_s17, 4  ;;  %s1045_s23 = int_to_ptr.vmem [resolvable:$false] %s1044_s23 }
  0x4f   : > { %731 = vmatpush1.bf16.msra.mxu1 %v1004_v50  ;;  %p1042_p1 = pnand %p1041_p0, %p1176_p6  ;;  %s1046_s25 = scalar_lea.vmem %s1045_s23, 512 }
  0x50   : > { %932 = vmatpush3.bf16.msra.mxu0 %v987_v45  ;;  %732 = vmatprep.subr.bf16.mxu1 %v1005_v51  ;;  %p1047_p3 = scmp.lt.s32.totalorder %s1339_s11, %s1045_s23  ;;  %p1048_p4 = scmp.lt.s32.totalorder %s1046_s25, %s1040_s15 }
  0x51   : > { %933 = vmatprep.subr.bf16.mxu0 %v1104_v33  ;;  %p1043_p2 = pneg %p1042_p1 }
  0x52   : > { %p1049_p5 = por %p1048_p4, %p1047_p3 }
  0x53   : > { %733 = vmatpush1.bf16.msra.mxu1 %v1007_v52 }
  0x54   : > { %934 = vmatpush3.bf16.msra.mxu0 %v988_v48  ;;  %734 = vmatprep.subr.bf16.mxu1 %v1008_v53  ;;  %p1050_p7 = pnand %p1049_p5, %p1043_p2 }
  0x55   : > { %935 = vmatprep.subr.bf16.mxu0 %v1104_v33 }
  0x57   : > { %735 = vmatpush1.bf16.msra.mxu1 %v1010_v55 }
  0x58   : > { %936 = vmatpush3.bf16.msra.mxu0 %v989_v49  ;;  %736 = vmatprep.subr.bf16.mxu1 %v1011_v56 }
  0x5b   : > { %938 = vmatmul.mubr.bf16.vlgmr.msra.gmra.mrb[0].mxu0 %v404_v54  ;;  %737 = vmatpush1.bf16.msra.mxu1 %v1013_v57 }
  0x5c   : > { %738 = vmatprep.subr.bf16.mxu1 %v1014_v58 }
  0x5f   : > { %739 = vmatpush1.bf16.msra.mxu1 %v1016_v59 }
  0x60   : > { %740 = vmatprep.subr.bf16.mxu1 %v1017_v60 }
  0x63   : > { %741 = vmatpush1.bf16.msra.mxu1 %v1019_v61 }
  0x64   : > { %742 = vmatprep.subr.bf16.mxu1 %v1020_v62 }
  0x67   : > { %743 = vmatpush1.bf16.msra.mxu1 %v1022_v63 }
  0x68   : > { %744 = vmatprep.subr.bf16.mxu1 %v1023_v0 }
  0x6b   : > { %745 = vmatpush1.bf16.msra.mxu1 %v1025_v1 }
  0x6c   : > { %746 = vmatprep.subr.bf16.mxu1 %v1026_v2 }
  0x6f   : > { %747 = vmatpush1.bf16.msra.mxu1 %v1028_v3 }
  0x70   : > { %748 = vmatprep.subr.bf16.mxu1 %v1029_v4 }
  0x73   : > { %749 = vmatpush1.bf16.msra.mxu1 %v1031_v5 }
  0x74   : > { %750 = vmatprep.subr.bf16.mxu1 %v1032_v6 }
  0x77   : > { %751 = vmatpush1.bf16.msra.mxu1 %v1034_v7 }
  0x78   : > { %752 = vmatprep.subr.bf16.mxu1 %v1035_v8 }
  0x7b   : > { %753 = vmatpush1.bf16.msra.mxu1 %v1037_v9 }
 0x12e   : > { %v510_v11 = vpop.f32.mrb[0].mxu0 }
 0x12f   : > { %v511_v12 = vadd.f32 %v864_v10, %v510_v11  ;;  %v939_v13 = vpop.f32.mrb[1].mxu0 }
 0x130   : > { %v513_v14 = vpop.f32.mrb[2].mxu0 }
 0x131   : > { %1038 = vtanh.f32 %v511_v12  ;;  %v940_v15 = vpop.f32.mrb[3].mxu0 }
 0x13b   : > { %v1039_v16 = vpop.eup %1038 }
 0x13c   : > { %v517_v17 = vpack.c.bf16 %v1039_v16, %v1039_v16 }
 0x13e   : > { %754 = vmatprep.mubr.bf16.mxu1 %v517_v17 }
 0x13f   : > { %755 = vmatmul.mubr.bf16.vlgmr.msra.gmra.mrb[0].mxu1 %v404_v54 }
 0x212   : > { %v756_v25 = vpop.f32.mrb[0].mxu1 }
 0x213   : > { %v757_v26 = vadd.f32 %v756_v25, %v555_v23  ;;  %v758_v27 = vpop.f32.mrb[1].mxu1 }
 0x214   : > { %v759_v28 = vadd.f32 %v758_v27, %v559_v24  ;;  %v760_v29 = vpop.f32.mrb[2].mxu1 }
 0x215   : > { %763 = vst [vmem:[%s395_s10] sm:$0xff] %v757_v26  ;;  %v761_v30 = vpop.f32.mrb[3].mxu1 }
 0x216   : > { %764 = vst [vmem:[%s395_s10 + $0x8] sm:$0xff] %v759_v28 }
 0x217   : > { %1053 = shalt.err (!%p1050_p7)
}
 0x218   : > { %s1054_s16 = scalar_lea.hbm %s1337_s14, 256  ;;  %s1058_s6 = scalar_lea.hbm %s1385_s5, 1024 }
 0x219   : > { %p1055_p9 = scmp.ne.s32.totalorder %s1337_s14, %s1054_s16  ;;  %p1059_p12 = scmp.lt.u32.totalorder %s1337_s14, %s1385_s5 }
 0x21a   : > { %p1060_p13 = scmp.lt.u32.totalorder %s1058_s6, %s1054_s16  ;;  %p1062_p1 = scmp.lt.u32.totalorder %s1054_s16, %s1337_s14 }
 0x21b   : > { %p1056_p10 = pnand %p1055_p9, %p1176_p6 }
 0x21c   : > { %p1061_p0 = por %p1060_p13, %p1059_p12 }
 0x21d   : > { %p1057_p11 = pneg %p1056_p10 }
 0x21e   : > { %p1063_p2 = por %p1062_p1, %p1061_p0 }
 0x220   : > { %p1064_p3 = pnand %p1063_p2, %p1057_p11 }
 0x222   : > { %1067 = shalt.err (!%p1064_p3)
}
 0x223   : > { %941 = dma.vmem_to_hbm [thread:$0]  (%p1176_p6), %s1339_s11, 256, %s1337_s14, %s766_s22  }
 0x224 PF: > { %p947_p4 = scmp.ge.s32.totalorder %s1102_s21, 2  ;;  %s792_s9 = sand.u32 1, %s1090_s18  }
 0x225   : > { %s793_s10 = scalar_lea.sflag [#allocation4], %s792_s9 }
 0x226   : > { %p944_p5 = pnand %p947_p4, %p1180_p8 }
 0x228   : > { %1085 = dma.done.wait (!%p944_p5), %s793_s10, 256  }
 0x229   : > { %1087 = vsyncadd (!%p944_p5), %s793_s10, 4294967040  ;;  %p15_p7 = scmp.ge.s32.totalorder %s1162_s24, 6   ;;  %s1388_s18 = smov %s1094_s19 }
 0x22a   : > { %s1389_s19 = smov %s1098_s20  ;;  %s1390_s20 = smov %s1174_s27 }
 0x22b   : > { %s1391_s21 = smov %s1162_s24  ;;  %17 = sbr.rel (!%p15_p7) target bundleno = 3 (0x3), region = 121 }
 0x232   :  { %798 = vsyncpa [#allocation4], 1 }
 0x233   :  { %800 = vsyncpa [#allocation4 + $0x1], 1 }

</bundles_post_ra>
